<compile_context>
chip_gen: v7x
topology: tpu7x:2x2x1
jax: 0.10.0
libtpu: 0.0.40
codegen_flags: <defaults>
</compile_context>

<pallas_src>
import math

import jax
import jax.numpy as jnp
import numpy as np
from jax.experimental import pallas as pl
from jax.experimental.pallas import tpu as pltpu


def make_bernnet_kernel(K, adj_is_normalized):
    """K: Bernstein order (Python int, trace-time).
    adj_is_normalized: True  -> a_ref holds f32 D^-1/2 A D^-1/2 (dinv unused)
                       False -> a_ref holds bf16 binary A, dinv applied per prop.
    """

    def kernel(coef_ref, a_ref, dinv_ref, x_ref, w1_ref, b1_ref, w2_ref,
               b2_ref, w3_ref, b3_ref, out_ref):
        x = x_ref[...]                                       # [Np, Fp]

        # linear1 + ReLU, linear2 + ReLU  (full-tile MXU matmuls, f32 acc)
        h = jnp.dot(x, w1_ref[...], preferred_element_type=jnp.float32) + b1_ref[...]
        h = jnp.maximum(h, 0.0)
        h = jnp.dot(h, w2_ref[...], preferred_element_type=jnp.float32) + b2_ref[...]
        h = jnp.maximum(h, 0.0)

        a = a_ref[...]                                       # [Np, Np]
        if adj_is_normalized:
            # Pre-normalized f32 adjacency: one pure MXU matmul per propagation.
            # NOTE: host-side pre-normalization reassociates the D^-1/2 scaling
            # vs the reference's per-prop (A @ (f*dinv))*dinv; difference is at
            # the ~1e-6 relative level (benign under the 1e-4 tolerance).
            def prop(f):
                return jnp.dot(a, f, preferred_element_type=jnp.float32)
        else:
            # Binary adjacency kept exact in bf16 -> native bf16 MXU pass.
            dinv = dinv_ref[...]                             # [Np, 1] f32
            def prop(f):
                fs = (f * dinv).astype(a_ref.dtype)
                return jnp.dot(a, fs, preferred_element_type=jnp.float32) * dinv

        # BernConv:  feat <- (2I - L_hat)^K h  ==  (I + A_hat)^K h
        feat = h
        for _ in range(K):
            feat = feat + prop(feat)

        # Reference applies unnLaplacian1 to the *final* feat inside its inner
        # loop, so every i>=1 Bernstein term is L_hat @ feat.  Folded combine:
        #   out = (c0 + c_lap)*feat - c_lap*(A_hat @ feat)
        # coef[0] = c0 + c_lap, coef[1] = c_lap (both host-folded with
        # relu(w_i) * comb(K, i)/2^K).  Skip the matmul at trace time if K==0.
        if K > 0:
            out_bern = coef_ref[0] * feat - coef_ref[1] * prop(feat)
        else:
            out_bern = coef_ref[0] * feat

        h2 = jnp.maximum(out_bern, 0.0)

        # final MLP (mlp_layers=1): h_feats -> num_classes, lane-dense store.
        out_ref[...] = (jnp.dot(h2, w3_ref[...],
                                preferred_element_type=jnp.float32)
                        + b3_ref[...])

    return kernel


def _round_up(n, m):
    return ((n + m - 1) // m) * m


def _vmem_capacity_bytes():
    try:
        return int(pltpu.get_tpu_info().vmem_capacity_bytes)
    except Exception:
        return 64 << 20          # conservative fallback (v7x-sized)


def bernnet_forward(adj, x, params, K, *, adj_in_bf16=False):
    N, in_feats = x.shape
    h_feats = params["w1"].shape[1]
    num_classes = params["w3"].shape[1]

    # ---- host-side prep (plain XLA ops, once per call) ---------------------
    # Pad every dim to a multiple of 128 with exact zeros so each matmul is a
    # full MXU tile and every intermediate vreg is lane/sublane-dense.
    Np = _round_up(max(N, 8), 128)
    Fp = _round_up(in_feats, 128)
    Hp = _round_up(h_feats, 128)
    Cp = _round_up(num_classes, 128)

    adj_p = jnp.pad(adj.astype(jnp.float32), ((0, Np - N), (0, Np - N)))
    x_p = jnp.pad(x.astype(jnp.float32), ((0, Np - N), (0, Fp - in_feats)))

    deg = jnp.maximum(jnp.sum(adj_p, axis=1, keepdims=True), 1.0)   # [Np, 1]
    dinv = (deg ** -0.5).astype(jnp.float32)

    if adj_in_bf16:
        # {0,1} values are exact in bf16; D^-1/2 scaling applied in-kernel.
        a_op = adj_p.astype(jnp.bfloat16)
    else:
        # Pre-normalized f32 adjacency: A_hat = D^-1/2 A D^-1/2.
        a_op = (adj_p * dinv) * jnp.transpose(dinv)

    # Folded Bernstein scalars:  coef[0] = c0 + c_lap,  coef[1] = c_lap.
    w_relu = jnp.maximum(params["wb"], 0.0)                          # [K+1]
    binom = jnp.asarray([math.comb(K, i) / 2.0 ** K for i in range(K + 1)],
                        jnp.float32)
    c0 = binom[0] * w_relu[0]
    c_lap = jnp.sum(binom[1:] * w_relu[1:])                          # 0.0 if K==0
    coef = jnp.stack([c0 + c_lap, c_lap]).astype(jnp.float32)        # [2] -> SMEM

    # Zero-padded weights (rows padded with zeros never contribute).
    w1 = jnp.pad(params["w1"], ((0, Fp - in_feats), (0, Hp - h_feats)))
    b1 = jnp.pad(params["b1"], ((0, 0), (0, Hp - h_feats)))
    w2 = jnp.pad(params["w2"], ((0, Hp - h_feats), (0, Hp - h_feats)))
    b2 = jnp.pad(params["b2"], ((0, 0), (0, Hp - h_feats)))
    w3 = jnp.pad(params["w3"], ((0, Hp - h_feats), (0, Cp - num_classes)))
    b3 = jnp.pad(params["b3"], ((0, 0), (0, Cp - num_classes)))

    vmem = pltpu.MemorySpace.VMEM
    smem = pltpu.MemorySpace.SMEM

    # VMEM budget: resident operands + output + a handful of [Np, Hp] f32
    # temporaries, plus margin; clamped to this chip's physical VMEM.  No
    # grid -> no double-buffering factor.
    operands = (a_op, dinv, x_p, w1, b1, w2, b2, w3, b3)
    resident = sum(int(np.prod(a.shape)) * a.dtype.itemsize for a in operands)
    resident += Np * Cp * 4                       # output
    resident += 6 * Np * Hp * 4                   # live feat/h temporaries
    cap = _vmem_capacity_bytes()
    vmem_limit = int(resident * 1.2) + (8 << 20)
    vmem_limit = max(vmem_limit, 32 << 20)
    vmem_limit = min(vmem_limit, int(cap * 0.9))

    # Advisory cost for XLA's scheduler around the custom call.
    n_prop = K + (1 if K > 0 else 0)
    flops = (2 * Np * Fp * Hp + 2 * Np * Hp * Hp          # linear1, linear2
             + 2 * n_prop * Np * Np * Hp                  # propagation chain
             + 2 * Np * Hp * Cp)                          # final linear
    bytes_accessed = resident + Np * Cp * 4
    cost = pl.CostEstimate(flops=int(flops), transcendentals=0,
                           bytes_accessed=int(bytes_accessed))

    out_padded = pl.pallas_call(
        make_bernnet_kernel(K, adj_is_normalized=not adj_in_bf16),
        out_shape=jax.ShapeDtypeStruct((Np, Cp), jnp.float32),
        in_specs=[
            pl.BlockSpec(memory_space=smem),   # folded Bernstein scalars [2]
            pl.BlockSpec(memory_space=vmem),   # A (normalized f32 or binary bf16)
            pl.BlockSpec(memory_space=vmem),   # dinv [Np, 1]
            pl.BlockSpec(memory_space=vmem),   # x  [Np, Fp]
            pl.BlockSpec(memory_space=vmem),   # W1 [Fp, Hp]
            pl.BlockSpec(memory_space=vmem),   # b1 [1, Hp]
            pl.BlockSpec(memory_space=vmem),   # W2 [Hp, Hp]
            pl.BlockSpec(memory_space=vmem),   # b2 [1, Hp]
            pl.BlockSpec(memory_space=vmem),   # W3 [Hp, Cp]
            pl.BlockSpec(memory_space=vmem),   # b3 [1, Cp]
        ],
        out_specs=pl.BlockSpec(memory_space=vmem),
        compiler_params=pltpu.CompilerParams(vmem_limit_bytes=vmem_limit),
        cost_estimate=cost,
    )(coef, a_op, dinv, x_p, w1, b1, w2, b2, w3, b3)

    return out_padded[:N, :num_classes]


def bernnet_reference(adj, x, params, K):
    """Pure-JAX reference, line-for-line faithful to the PyTorch module."""
    deg = jnp.maximum(jnp.sum(adj, axis=1), 1.0)
    dinv = deg[:, None] ** -0.5
    h = jnp.maximum(x @ params["w1"] + params["b1"], 0.0)
    h = jnp.maximum(h @ params["w2"] + params["b2"], 0.0)

    w = jnp.maximum(params["wb"], 0.0)

    def unnL1(f):
        return f - (adj @ (f * dinv)) * dinv

    def unnL2(f):
        return f + (adj @ (f * dinv)) * dinv

    feat = h
    tmp = [feat]
    for _ in range(K):
        feat = unnL2(feat)
        tmp.append(feat)
    out = math.comb(K, 0) / 2 ** K * w[0] * tmp[K]
    for i in range(K):
        xx = tmp[K - i - 1]
        for _ in range(i + 1):
            xx = unnL1(feat)          # (sic) applies to `feat`, as in the reference
        out = out + math.comb(K, i + 1) / 2 ** K * w[i + 1] * xx

    h = jnp.maximum(out, 0.0)
    return h @ params["w3"] + params["b3"]


def init_params(key, in_feats, h_feats, num_classes, K):
    ks = jax.random.split(key, 6)

    def linear(kw, kb, fan_in, fan_out):
        bound = 1.0 / math.sqrt(fan_in)
        w = jax.random.uniform(kw, (fan_in, fan_out), jnp.float32, -bound, bound)
        b = jax.random.uniform(kb, (1, fan_out), jnp.float32, -bound, bound)
        return w, b

    w1, b1 = linear(ks[0], ks[1], in_feats, h_feats)
    w2, b2 = linear(ks[2], ks[3], h_feats, h_feats)
    w3, b3 = linear(ks[4], ks[5], h_feats, num_classes)
    wb = jnp.ones((K + 1,), jnp.float32)      # BernConv weight = ones(K+1)
    return {"w1": w1, "b1": b1, "w2": w2, "b2": b2,
            "wb": wb, "w3": w3, "b3": b3}


if __name__ == "__main__":
    N, in_feats, h_feats, num_classes, K = 16, 16, 32, 2, 2

    key = jax.random.PRNGKey(0)
    k_adj, k_feat, k_param = jax.random.split(key, 3)

    adj = jax.random.bernoulli(k_adj, 0.3, (N, N)).astype(jnp.float32)
    x = jax.random.normal(k_feat, (N, in_feats), jnp.float32)
    params = init_params(k_param, in_feats, h_feats, num_classes, K)

    ref = bernnet_reference(adj, x, params, K)

    # Default path: f32 pre-normalized adjacency — bitwise-close to reference.
    out = jax.block_until_ready(bernnet_forward(adj, x, params, K))
    np.testing.assert_allclose(np.asarray(out), np.asarray(ref),
                               rtol=1e-4, atol=1e-4)

    # bf16 binary-adjacency fast path — exact A, bf16-rounded feat operand.
    out_bf16 = jax.block_until_ready(
        bernnet_forward(adj, x, params, K, adj_in_bf16=True))
    np.testing.assert_allclose(np.asarray(out_bf16), np.asarray(ref),
                               rtol=2e-2, atol=2e-2)

    # K == 0 path (Laplacian matmul skipped at trace time).
    params0 = init_params(k_param, in_feats, h_feats, num_classes, 0)
    ref0 = bernnet_reference(adj, x, params0, 0)
    out0 = jax.block_until_ready(bernnet_forward(adj, x, params0, 0))
    np.testing.assert_allclose(np.asarray(out0), np.asarray(ref0),
                               rtol=1e-4, atol=1e-4)

    print("KERNEL_OK")
</pallas_src>

<mosaic_0001>
module attributes {stable_mosaic.version = 11 : i64} {
  func.func @kernel(%arg0: memref<2xf32, #tpu.memory_space<smem>>, %arg1: memref<128x128xf32, #tpu.memory_space<vmem>>, %arg2: memref<128x1xf32, #tpu.memory_space<vmem>>, %arg3: memref<128x128xf32, #tpu.memory_space<vmem>>, %arg4: memref<128x128xf32, #tpu.memory_space<vmem>>, %arg5: memref<1x128xf32, #tpu.memory_space<vmem>>, %arg6: memref<128x128xf32, #tpu.memory_space<vmem>>, %arg7: memref<1x128xf32, #tpu.memory_space<vmem>>, %arg8: memref<128x128xf32, #tpu.memory_space<vmem>>, %arg9: memref<1x128xf32, #tpu.memory_space<vmem>>, %arg10: memref<128x128xf32, #tpu.memory_space<vmem>>) attributes {dimension_semantics = [], scalar_prefetch = 0 : i64, scratch_operands = 0 : i64, tpu.core_type = #tpu.core_type<tc>} {
    %c0 = arith.constant 0 : index
    %c0_0 = arith.constant 0 : index
    %0 = vector.load %arg3[%c0, %c0_0] : memref<128x128xf32, #tpu.memory_space<vmem>>, vector<128x128xf32>
    %c0_1 = arith.constant 0 : index
    %c0_2 = arith.constant 0 : index
    %1 = vector.load %arg4[%c0_1, %c0_2] : memref<128x128xf32, #tpu.memory_space<vmem>>, vector<128x128xf32>
    %cst = arith.constant dense<0.000000e+00> : vector<128x128xf32>
    %2 = tpu.matmul %0, %1, %cst {dimension_numbers = #tpu.dot_dimension_numbers<[1], [0], [0], [1], [0, 0, 1, 1], [], []>} : vector<128x128xf32>, vector<128x128xf32>, vector<128x128xf32> -> vector<128x128xf32>
    %c0_3 = arith.constant 0 : index
    %c0_4 = arith.constant 0 : index
    %3 = vector.load %arg5[%c0_3, %c0_4] : memref<1x128xf32, #tpu.memory_space<vmem>>, vector<1x128xf32>
    %4 = vector.broadcast %3 : vector<1x128xf32> to vector<128x128xf32>
    %5 = arith.addf %2, %4 : vector<128x128xf32>
    %cst_5 = arith.constant 0.000000e+00 : f32
    %6 = vector.broadcast %cst_5 : f32 to vector<128x128xf32>
    %7 = arith.maximumf %5, %6 : vector<128x128xf32>
    %c0_6 = arith.constant 0 : index
    %c0_7 = arith.constant 0 : index
    %8 = vector.load %arg6[%c0_6, %c0_7] : memref<128x128xf32, #tpu.memory_space<vmem>>, vector<128x128xf32>
    %cst_8 = arith.constant dense<0.000000e+00> : vector<128x128xf32>
    %9 = tpu.matmul %7, %8, %cst_8 {dimension_numbers = #tpu.dot_dimension_numbers<[1], [0], [0], [1], [0, 0, 1, 1], [], []>} : vector<128x128xf32>, vector<128x128xf32>, vector<128x128xf32> -> vector<128x128xf32>
    %c0_9 = arith.constant 0 : index
    %c0_10 = arith.constant 0 : index
    %10 = vector.load %arg7[%c0_9, %c0_10] : memref<1x128xf32, #tpu.memory_space<vmem>>, vector<1x128xf32>
    %11 = vector.broadcast %10 : vector<1x128xf32> to vector<128x128xf32>
    %12 = arith.addf %9, %11 : vector<128x128xf32>
    %cst_11 = arith.constant 0.000000e+00 : f32
    %13 = vector.broadcast %cst_11 : f32 to vector<128x128xf32>
    %14 = arith.maximumf %12, %13 : vector<128x128xf32>
    %c0_12 = arith.constant 0 : index
    %c0_13 = arith.constant 0 : index
    %15 = vector.load %arg1[%c0_12, %c0_13] : memref<128x128xf32, #tpu.memory_space<vmem>>, vector<128x128xf32>
    %cst_14 = arith.constant dense<0.000000e+00> : vector<128x128xf32>
    %16 = tpu.matmul %15, %14, %cst_14 {dimension_numbers = #tpu.dot_dimension_numbers<[1], [0], [0], [1], [0, 0, 1, 1], [], []>} : vector<128x128xf32>, vector<128x128xf32>, vector<128x128xf32> -> vector<128x128xf32>
    %17 = arith.addf %14, %16 : vector<128x128xf32>
    %cst_15 = arith.constant dense<0.000000e+00> : vector<128x128xf32>
    %18 = tpu.matmul %15, %17, %cst_15 {dimension_numbers = #tpu.dot_dimension_numbers<[1], [0], [0], [1], [0, 0, 1, 1], [], []>} : vector<128x128xf32>, vector<128x128xf32>, vector<128x128xf32> -> vector<128x128xf32>
    %19 = arith.addf %17, %18 : vector<128x128xf32>
    %c0_16 = arith.constant 0 : index
    %20 = memref.load %arg0[%c0_16] : memref<2xf32, #tpu.memory_space<smem>>
    %21 = vector.broadcast %20 : f32 to vector<128x128xf32>
    %22 = arith.mulf %21, %19 : vector<128x128xf32>
    %c1 = arith.constant 1 : index
    %23 = memref.load %arg0[%c1] : memref<2xf32, #tpu.memory_space<smem>>
    %cst_17 = arith.constant dense<0.000000e+00> : vector<128x128xf32>
    %24 = tpu.matmul %15, %19, %cst_17 {dimension_numbers = #tpu.dot_dimension_numbers<[1], [0], [0], [1], [0, 0, 1, 1], [], []>} : vector<128x128xf32>, vector<128x128xf32>, vector<128x128xf32> -> vector<128x128xf32>
    %25 = vector.broadcast %23 : f32 to vector<128x128xf32>
    %26 = arith.mulf %25, %24 : vector<128x128xf32>
    %27 = arith.subf %22, %26 : vector<128x128xf32>
    %cst_18 = arith.constant 0.000000e+00 : f32
    %28 = vector.broadcast %cst_18 : f32 to vector<128x128xf32>
    %29 = arith.maximumf %27, %28 : vector<128x128xf32>
    %c0_19 = arith.constant 0 : index
    %c0_20 = arith.constant 0 : index
    %30 = vector.load %arg8[%c0_19, %c0_20] : memref<128x128xf32, #tpu.memory_space<vmem>>, vector<128x128xf32>
    %cst_21 = arith.constant dense<0.000000e+00> : vector<128x128xf32>
    %31 = tpu.matmul %29, %30, %cst_21 {dimension_numbers = #tpu.dot_dimension_numbers<[1], [0], [0], [1], [0, 0, 1, 1], [], []>} : vector<128x128xf32>, vector<128x128xf32>, vector<128x128xf32> -> vector<128x128xf32>
    %c0_22 = arith.constant 0 : index
    %c0_23 = arith.constant 0 : index
    %32 = vector.load %arg9[%c0_22, %c0_23] : memref<1x128xf32, #tpu.memory_space<vmem>>, vector<1x128xf32>
    %33 = vector.broadcast %32 : vector<1x128xf32> to vector<128x128xf32>
    %34 = arith.addf %31, %33 : vector<128x128xf32>
    %c0_24 = arith.constant 0 : index
    %c0_25 = arith.constant 0 : index
    %35 = vector.load %arg10[%c0_24, %c0_25] : memref<128x128xf32, #tpu.memory_space<vmem>>, vector<128x128xf32>
    tpu.vector_store %arg10[%c0_24, %c0_25], %34 {strides = array<i32>} : memref<128x128xf32, #tpu.memory_space<vmem>>, vector<128x128xf32>,
    return
  }
}

</mosaic_0001>

<bundles_post_ra>
// kernel: tpu_custom_call.1
= control target key start
LH: loop header
LB: loop body
LE: loop exit
PB: predicated region body
PF: predicated region fallthrough
CT: control target
= control target key end

     0   :  { %15 = vsyncpa [#allocation5], 0  ;;  %s2686_s0 = inlined_call_operand.vmem [shape: f32[2], index: 0, kind: input, shape index: {}]   ;;  %s2687_s1 = inlined_call_operand.vmem [shape: f32[128,128], index: 1, kind: input, shape index: {}]   ;;  %s2688_s2 = inlined_call_operand.vmem [shape: f32[128,1], index: 2, kind: input, shape index: {}]   ;;  %s2689_s3 = inlined_call_operand.hbm [shape: f32[128,128], index: 3, kind: input, shape index: {}]   ;;  %s2690_s4 = inlined_call_operand.hbm [shape: f32[128,128], index: 4, kind: input, shape index: {}]   ;;  %s2691_s5 = inlined_call_operand.vmem [shape: f32[1,128], index: 5, kind: input, shape index: {}]   ;;  %s2692_s6 = inlined_call_operand.hbm [shape: f32[128,128], index: 6, kind: input, shape index: {}]   ;;  %s2693_s7 = inlined_call_operand.vmem [shape: f32[1,128], index: 7, kind: input, shape index: {}]   ;;  %s2694_s8 = inlined_call_operand.hbm [shape: f32[128,128], index: 8, kind: input, shape index: {}]   ;;  %s2695_s9 = inlined_call_operand.vmem [shape: f32[1,128], index: 9, kind: input, shape index: {}]   ;;  %s2696_s10 = inlined_call_operand.hbm [shape: f32[128,128], index: 10, kind: output, shape index: {}]  }
   0x1   :  { %16 = vsyncpa [#allocation3], 0 }
   0x2   :  { %17 = vsyncpa [#allocation8], 0 }
   0x3   :  { %18 = vsyncpa [#allocation11], 0 }
   0x4   :  { %19 = vsyncpa [#allocation4], 0  ;;  %s26_s14 = sshll.u32 %s2686_s0, 4  ;;  %s2107_s15 = smov [#allocation7]   ;;  %s27_s14 = int_to_ptr.vmem [resolvable:$true] %s26_s14 }
   0x5   :  { %s51_s16 = sshll.u32 %s2107_s15, 4  ;;  %s1975_s19 = scalar_lea.hbm %s2690_s4, 2048  ;;  %s52_s16 = int_to_ptr.vmem [resolvable:$true] %s51_s16 }
   0x6   :  { %p1976_p0 = scmp.ne.s32.totalorder %s2690_s4, %s1975_s19  ;;  %p1979_p1 = scmp.lt.u32.totalorder %s1975_s19, %s2690_s4 }
   0x8   :  { %p1981_p2 = pnand %p1979_p1, %p1976_p0 }
   0xa   :  { %1984 = shalt.err (!%p1981_p2)
}
   0xb   :  { %s1985_s24 = scalar_lea.vmem %s52_s16, 2048  ;;  %p1990_p4 = scmp.lt.s32.totalorder %s52_s16, %s52_s16 }
   0xc   :  { %p1986_p3 = scmp.ne.s32.totalorder %s52_s16, %s1985_s24  ;;  %p1991_p5 = scmp.lt.s32.totalorder %s1985_s24, %s1985_s24 }
   0xe   :  { %p1992_p6 = por %p1991_p5, %p1990_p4 }
  0x10   :  { %p1993_p7 = pnand %p1992_p6, %p1986_p3 }
  0x12   :  { %1996 = shalt.err (!%p1993_p7)
}
  0x13   :  { %s2108_s0 = smov 128   ;;  %s2109_s25 = smov 8  }
  0x14   :  { %57 = dma.hbm_to_vmem [thread:$0]  %s2690_s4, 2048, %s52_s16, [#allocation8], %s2108_s0, %s2108_s0, %s2109_s25  }
  0x15   :  { %s1997_s28 = scalar_lea.vmem %s27_s14, 16  ;;  %p2002_p9 = scmp.lt.s32.totalorder %s27_s14, %s27_s14 }
  0x16   :  { %p1998_p8 = scmp.ne.s32.totalorder %s27_s14, %s1997_s28  ;;  %p2003_p10 = scmp.lt.s32.totalorder %s1997_s28, %s1997_s28 }
  0x18   :  { %p2004_p11 = por %p2003_p10, %p2002_p9 }
  0x1a   :  { %p2005_p12 = pnand %p2004_p11, %p1998_p8 }
  0x1c   :  { %2008 = shalt.err (!%p2005_p12)
}
  0x1d   :  { %s2110_s29 = smov [#allocation2]   ;;  %s2111_s2 = smov [#allocation6]  }
  0x1e   :  { %29 = dma.vmem_to_smem %s27_s14, 16, %s2110_s29, [#allocation5]  }
  0x1f   :  { %s39_s30 = sshll.u32 %s2111_s2, 4  ;;  %s2112_s11 = smov [#allocation9]   ;;  %s40_s30 = int_to_ptr.vmem [resolvable:$true] %s39_s30 }
  0x20   :  { %s65_s12 = sshll.u32 %s2112_s11, 4  ;;  %s2009_s4 = scalar_lea.hbm %s2689_s3, 2048  ;;  %s2188_s12 = int_to_ptr.vmem [resolvable:$true] %s65_s12 }
  0x21   :  { %p2010_p13 = scmp.ne.s32.totalorder %s2689_s3, %s2009_s4  ;;  %p2013_p0 = scmp.lt.u32.totalorder %s2009_s4, %s2689_s3 }
  0x23   :  { %p2015_p1 = pnand %p2013_p0, %p2010_p13 }
  0x25   :  { %2018 = shalt.err (!%p2015_p1)
}
  0x26   :  { %s2019_s14 = scalar_lea.vmem %s40_s30, 2048  ;;  %p2024_p3 = scmp.lt.s32.totalorder %s40_s30, %s40_s30 }
  0x27   :  { %p2020_p2 = scmp.ne.s32.totalorder %s40_s30, %s2019_s14  ;;  %p2025_p4 = scmp.lt.s32.totalorder %s2019_s14, %s2019_s14 }
  0x29   :  { %p2026_p5 = por %p2025_p4, %p2024_p3 }
  0x2b   :  { %p2027_p6 = pnand %p2026_p5, %p2020_p2 }
  0x2d   :  { %2030 = shalt.err (!%p2027_p6)
}
  0x2e   :  { %45 = dma.hbm_to_vmem [thread:$0]  %s2689_s3, 2048, %s40_s30, [#allocation3], %s2108_s0, %s2108_s0, %s2109_s25  }
  0x2f   :  { %s2031_s24 = scalar_lea.hbm %s2692_s6, 2048 }
  0x30   :  { %p2032_p7 = scmp.ne.s32.totalorder %s2692_s6, %s2031_s24  ;;  %p2035_p8 = scmp.lt.u32.totalorder %s2031_s24, %s2692_s6 }
  0x32   :  { %p2037_p9 = pnand %p2035_p8, %p2032_p7 }
  0x34   :  { %2040 = shalt.err (!%p2037_p9)
}
  0x35   :  { %s2041_s2 = scalar_lea.vmem %s2188_s12, 2048  ;;  %p2046_p11 = scmp.lt.s32.totalorder %s2188_s12, %s2188_s12 }
  0x36   :  { %p2042_p10 = scmp.ne.s32.totalorder %s2188_s12, %s2041_s2  ;;  %p2047_p12 = scmp.lt.s32.totalorder %s2041_s2, %s2041_s2 }
  0x38   :  { %p2048_p13 = por %p2047_p12, %p2046_p11 }
  0x3a   :  { %p2049_p0 = pnand %p2048_p13, %p2042_p10 }
  0x3c   :  { %2052 = shalt.err (!%p2049_p0)
}
  0x3d   :  { %71 = dma.hbm_to_vmem [thread:$0]  %s2692_s6, 2048, %s2188_s12, [#allocation8], %s2108_s0, %s2108_s0, %s2109_s25  }
  0x3e   :  { %s2113_s11 = smov [#allocation10]   ;;  %s2053_s16 = scalar_lea.hbm %s2694_s8, 2048 }
  0x3f   :  { %s79_s13 = sshll.u32 %s2113_s11, 4  ;;  %p2054_p1 = scmp.ne.s32.totalorder %s2694_s8, %s2053_s16  ;;  %s80_s13 = int_to_ptr.vmem [resolvable:$true] %s79_s13 }
  0x40   :  { %p2057_p2 = scmp.lt.u32.totalorder %s2053_s16, %s2694_s8 }
  0x42   :  { %p2059_p3 = pnand %p2057_p2, %p2054_p1 }
  0x44   :  { %2062 = shalt.err (!%p2059_p3)
}
  0x45   :  { %s2063_s20 = scalar_lea.vmem %s80_s13, 2048  ;;  %p2068_p5 = scmp.lt.s32.totalorder %s80_s13, %s80_s13 }
  0x46   :  { %p2064_p4 = scmp.ne.s32.totalorder %s80_s13, %s2063_s20  ;;  %p2069_p6 = scmp.lt.s32.totalorder %s2063_s20, %s2063_s20 }
  0x48   :  { %p2070_p7 = por %p2069_p6, %p2068_p5 }
  0x4a   :  { %p2071_p8 = pnand %p2070_p7, %p2064_p4 }
  0x4c   :  { %2074 = shalt.err (!%p2071_p8)
}
  0x4d   :  { %85 = dma.hbm_to_vmem [thread:$0]  %s2694_s8, 2048, %s80_s13, [#allocation11], %s2108_s0, %s2108_s0, %s2109_s25  }
  0x4e   :  { %2097 = dma.done.wait [#allocation5], 16  }
  0x4f   :  { %2098 = vsyncadd [#allocation5], 4294967280 }
  0x50   :  { %2099 = dma.done.wait [#allocation3], 2048  }
  0x51   :  { %2100 = vsyncadd [#allocation3], 4294965248 }
  0x52   :  { %2101 = dma.done.wait [#allocation8], 4096  }
  0x53   :  { %2102 = vsyncadd [#allocation8], 4294963200 }
  0x54   :  { %2103 = dma.done.wait [#allocation11], 2048  }
  0x55   :  { %2104 = vsyncadd [#allocation11], 4294965248 }
  0x56   :  { %103 = sfence }
  0x57   :  { %v120_v0 = vld [vmem:[#allocation7] sm:$0xff]  ;;  %v121_v1 = vld [vmem:[#allocation7 + $0x8] sm:$0xff]  ;;  %v122_v2 = vld [vmem:[#allocation7 + $0x10] sm:$0xff]  ;;  %s1245_s29 = sld [smem:[#allocation2 + $0x1]] }
  0x58   :  { %v1775_v3 = vpack.c.bf16 %v121_v1, %v120_v0  ;;  %v123_v4 = vld [vmem:[#allocation7 + $0x18] sm:$0xff]  ;;  %v124_v6 = vld [vmem:[#allocation7 + $0x20] sm:$0xff]  ;;  %v125_v7 = vld [vmem:[#allocation7 + $0x28] sm:$0xff] }
  0x59   :  { %v1779_v5 = vpack.c.bf16 %v123_v4, %v122_v2  ;;  %v1783_v8 = vpack.c.bf16 %v125_v7, %v124_v6  ;;  %v104_v9 = vld [vmem:[#allocation6] sm:$0xff]  ;;  %v126_v10 = vld [vmem:[#allocation7 + $0x30] sm:$0xff]  ;;  %v127_v11 = vld [vmem:[#allocation7 + $0x38] sm:$0xff] }
  0x5a   :  { %1776 = vmatprep.subr.bf16.mxu0 %v1775_v3  ;;  %1471 = vmatprep.mubr.f32.mxu0 %v104_v9  ;;  %v1787_v12 = vpack.c.bf16 %v127_v11, %v126_v10  ;;  %v128_v13 = vld [vmem:[#allocation7 + $0x40] sm:$0xff]  ;;  %v129_v14 = vld [vmem:[#allocation7 + $0x48] sm:$0xff]  ;;  %v306_v17 = vld [vmem:[#allocation9 + $0x10] sm:$0xff] }
  0x5b   :  { %1778 = vmatpush3.bf16.msra.mxu0 %v1775_v3  ;;  %v304_v15 = vld [vmem:[#allocation9] sm:$0xff]  ;;  %v305_v16 = vld [vmem:[#allocation9 + $0x8] sm:$0xff]  ;;  %v307_v18 = vld [vmem:[#allocation9 + $0x18] sm:$0xff]  ;;  %v1791_v21 = vpack.c.bf16 %v129_v14, %v128_v13 }
  0x5c   :  { %1780 = vmatprep.subr.bf16.mxu0 %v1779_v5  ;;  %v1807_v19 = vpack.c.bf16 %v305_v16, %v304_v15  ;;  %v1811_v20 = vpack.c.bf16 %v307_v18, %v306_v17  ;;  %v308_v22 = vld [vmem:[#allocation9 + $0x20] sm:$0xff]  ;;  %v309_v23 = vld [vmem:[#allocation9 + $0x28] sm:$0xff]  ;;  %v130_v24 = vld [vmem:[#allocation7 + $0x50] sm:$0xff] }
  0x5d   :  { %v131_v25 = vld [vmem:[#allocation7 + $0x58] sm:$0xff]  ;;  %v1815_v26 = vpack.c.bf16 %v309_v23, %v308_v22  ;;  %v310_v28 = vld [vmem:[#allocation9 + $0x30] sm:$0xff]  ;;  %v132_v30 = vld [vmem:[#allocation7 + $0x60] sm:$0xff] }
  0x5e   :  { %1808 = vmatprep.subr.bf16.mxu1 %v1807_v19  ;;  %v1795_v27 = vpack.c.bf16 %v131_v25, %v130_v24  ;;  %v311_v29 = vld [vmem:[#allocation9 + $0x38] sm:$0xff]  ;;  %v133_v31 = vld [vmem:[#allocation7 + $0x68] sm:$0xff]  ;;  %v312_v34 = vld [vmem:[#allocation9 + $0x40] sm:$0xff] }
  0x5f   :  { %1782 = vmatpush3.bf16.msra.mxu0 %v1779_v5  ;;  %1810 = vmatpush3.bf16.msra.mxu1 %v1807_v19  ;;  %v1819_v32 = vpack.c.bf16 %v311_v29, %v310_v28  ;;  %v1799_v33 = vpack.c.bf16 %v133_v31, %v132_v30  ;;  %v313_v35 = vld [vmem:[#allocation9 + $0x48] sm:$0xff]  ;;  %v134_v36 = vld [vmem:[#allocation7 + $0x70] sm:$0xff]  ;;  %v135_v37 = vld [vmem:[#allocation7 + $0x78] sm:$0xff] }
  0x60   :  { %1784 = vmatprep.subr.bf16.mxu0 %v1783_v8  ;;  %1812 = vmatprep.subr.bf16.mxu1 %v1811_v20  ;;  %v1823_v38 = vpack.c.bf16 %v313_v35, %v312_v34  ;;  %v1803_v39 = vpack.c.bf16 %v135_v37, %v134_v36  ;;  %v314_v40 = vld [vmem:[#allocation9 + $0x50] sm:$0xff]  ;;  %v315_v41 = vld [vmem:[#allocation9 + $0x58] sm:$0xff]  ;;  %v316_v43 = vld [vmem:[#allocation9 + $0x60] sm:$0xff] }
  0x61   :  { %v1827_v42 = vpack.c.bf16 %v315_v41, %v314_v40  ;;  %v317_v44 = vld [vmem:[#allocation9 + $0x68] sm:$0xff]  ;;  %v106_v47 = vld [vmem:[#allocation6 + $0x10] sm:$0xff]  ;;  %v107_v48 = vld [vmem:[#allocation6 + $0x18] sm:$0xff] }
  0x62   :  { %v105_v45 = vld [vmem:[#allocation6 + $0x8] sm:$0xff]  ;;  %v1831_v46 = vpack.c.bf16 %v317_v44, %v316_v43  ;;  %v108_v49 = vld [vmem:[#allocation6 + $0x20] sm:$0xff]  ;;  %v110_v51 = vld [vmem:[#allocation6 + $0x30] sm:$0xff] }
  0x63   :  { %1786 = vmatpush3.bf16.msra.mxu0 %v1783_v8  ;;  %1814 = vmatpush3.bf16.msra.mxu1 %v1811_v20  ;;  %v109_v50 = vld [vmem:[#allocation6 + $0x28] sm:$0xff]  ;;  %v111_v52 = vld [vmem:[#allocation6 + $0x38] sm:$0xff]  ;;  %v112_v53 = vld [vmem:[#allocation6 + $0x40] sm:$0xff] }
  0x64   :  { %1788 = vmatprep.subr.bf16.mxu0 %v1787_v12  ;;  %1816 = vmatprep.subr.bf16.mxu1 %v1815_v26  ;;  %v113_v54 = vld [vmem:[#allocation6 + $0x48] sm:$0xff]  ;;  %v114_v55 = vld [vmem:[#allocation6 + $0x50] sm:$0xff]  ;;  %v115_v56 = vld [vmem:[#allocation6 + $0x58] sm:$0xff] }
  0x65   :  { %v116_v57 = vld [vmem:[#allocation6 + $0x60] sm:$0xff]  ;;  %v117_v58 = vld [vmem:[#allocation6 + $0x68] sm:$0xff]  ;;  %v118_v59 = vld [vmem:[#allocation6 + $0x70] sm:$0xff] }
  0x66   :  { %v119_v60 = vld [vmem:[#allocation6 + $0x78] sm:$0xff]  ;;  %v318_v61 = vld [vmem:[#allocation9 + $0x70] sm:$0xff]  ;;  %v1243_v0 = vld [vmem:[%s2691_s5] ss:$0 sm:$0xff] }
  0x67   :  { %1790 = vmatpush3.bf16.msra.mxu0 %v1787_v12  ;;  %1818 = vmatpush3.bf16.msra.mxu1 %v1815_v26  ;;  %v319_v62 = vld [vmem:[#allocation9 + $0x78] sm:$0xff] }
  0x68   :  { %1792 = vmatprep.subr.bf16.mxu0 %v1791_v21  ;;  %1820 = vmatprep.subr.bf16.mxu1 %v1819_v32  ;;  %v1835_v63 = vpack.c.bf16 %v319_v62, %v318_v61 }
  0x6b   :  { %1794 = vmatpush3.bf16.msra.mxu0 %v1791_v21  ;;  %1822 = vmatpush3.bf16.msra.mxu1 %v1819_v32 }
  0x6c   :  { %1796 = vmatprep.subr.bf16.mxu0 %v1795_v27  ;;  %1824 = vmatprep.subr.bf16.mxu1 %v1823_v38 }
  0x6f   :  { %1798 = vmatpush3.bf16.msra.mxu0 %v1795_v27  ;;  %1826 = vmatpush3.bf16.msra.mxu1 %v1823_v38 }
  0x70   :  { %1800 = vmatprep.subr.bf16.mxu0 %v1799_v33  ;;  %1828 = vmatprep.subr.bf16.mxu1 %v1827_v42 }
  0x73   :  { %1802 = vmatpush3.bf16.msra.mxu0 %v1799_v33  ;;  %1830 = vmatpush3.bf16.msra.mxu1 %v1827_v42 }
  0x74   :  { %1804 = vmatprep.subr.bf16.mxu0 %v1803_v39  ;;  %1832 = vmatprep.subr.bf16.mxu1 %v1831_v46 }
  0x77   :  { %1806 = vmatpush3.bf16.msra.mxu0 %v1803_v39  ;;  %1834 = vmatpush3.bf16.msra.mxu1 %v1831_v46 }
  0x78   :  { %1836 = vmatprep.subr.bf16.mxu1 %v1835_v63 }
  0x7a   :  { %1472 = vmatmul.mubr.f32.vlgmr.msra.gmra.mrb[0].mxu0 %v105_v45 }
  0x7b   :  { %1474 = vmatprep.mubr.f32.mxu0 %v106_v47  ;;  %1838 = vmatpush3.bf16.msra.mxu1 %v1835_v63 }
  0x7e   :  { %1475 = vmatmul.mubr.f32.gmra.mrb[2].mxu0 %v107_v48 }
  0x7f   :  { %1477 = vmatprep.mubr.f32.mxu0 %v108_v49  ;;  %v2246_v49 = vld [vmem:[%s2687_s1] sm:$0xff] }
  0x82   :  { %1478 = vmatmul.mubr.f32.gmra.mrb[4].mxu0 %v109_v50  ;;  %v2253_v50 = vld [vmem:[%s2693_s7] ss:$0 sm:$0xff] }
  0x83   :  { %1480 = vmatprep.mubr.f32.mxu0 %v110_v51 }
  0x86   :  { %1481 = vmatmul.mubr.f32.gmra.mrb[6].mxu0 %v111_v52 }
  0x87   :  { %1483 = vmatprep.mubr.f32.mxu0 %v112_v53 }
  0x8a   :  { %1484 = vmatmul.mubr.f32.gmra.mrb[8].mxu0 %v113_v54 }
  0x8b   :  { %1486 = vmatprep.mubr.f32.mxu0 %v114_v55 }
  0x8e   :  { %1487 = vmatmul.mubr.f32.gmra.mrb[10].mxu0 %v115_v56 }
  0x8f   :  { %1489 = vmatprep.mubr.f32.mxu0 %v116_v57 }
  0x92   :  { %1490 = vmatmul.mubr.f32.gmra.mrb[12].mxu0 %v117_v58 }
  0x93   :  { %1492 = vmatprep.mubr.f32.mxu0 %v118_v59 }
  0x96   :  { %1493 = vmatmul.mubr.f32.gmra.mrb[14].mxu0 %v119_v60 }
  0x97   :  { %1583 = vmatprep.mubr.f32.mxu0 %v2246_v49 }
 0x14d   :  { %v1473_v1 = vpop.f32.mrb[0].mxu0 }
 0x14e   :  { %v215_v2 = vadd.f32 %v1473_v1, %v1243_v0  ;;  %v209_v3 = vpop.f32.mrb[1].mxu0 }
 0x14f   :  { %v210_v4 = vadd.f32 %v1243_v0, %v209_v3 }
 0x150   :  { %v289_v7 = vmax.f32 %v215_v2, 0.0 }
 0x151   :  { %v1476_v5 = vpop.f32.mrb[2].mxu0  ;;  %v288_v6 = vmax.f32 %v210_v4, 0.0 }
 0x152   :  { %v225_v8 = vadd.f32 %v1476_v5, %v1243_v0  ;;  %v219_v9 = vpop.f32.mrb[3].mxu0 }
 0x153   :  { %v220_v10 = vadd.f32 %v1243_v0, %v219_v9  ;;  %1527 = vmatprep.mubr.f32.mxu1 %v288_v6 }
 0x154   :  { %1528 = vmatmul.mubr.f32.vlgmr.msra.gmra.mrb[0].mxu1 %v289_v7  ;;  %v291_v13 = vmax.f32 %v225_v8, 0.0 }
 0x155   :  { %v290_v11 = vmax.f32 %v220_v10, 0.0  ;;  %v1479_v12 = vpop.f32.mrb[4].mxu0 }
 0x156   :  { %v235_v14 = vadd.f32 %v1479_v12, %v1243_v0  ;;  %v229_v15 = vpop.f32.mrb[5].mxu0 }
 0x157   :  { %v230_v16 = vadd.f32 %v1243_v0, %v229_v15  ;;  %1530 = vmatprep.mubr.f32.mxu1 %v290_v11 }
 0x158   :  { %1531 = vmatmul.mubr.f32.gmra.mrb[2].mxu1 %v291_v13  ;;  %v293_v19 = vmax.f32 %v235_v14, 0.0 }
 0x159   :  { %v292_v17 = vmax.f32 %v230_v16, 0.0  ;;  %v1482_v18 = vpop.f32.mrb[6].mxu0 }
 0x15a   :  { %v245_v20 = vadd.f32 %v1482_v18, %v1243_v0  ;;  %v239_v21 = vpop.f32.mrb[7].mxu0 }
 0x15b   :  { %v240_v22 = vadd.f32 %v1243_v0, %v239_v21  ;;  %1533 = vmatprep.mubr.f32.mxu1 %v292_v17 }
 0x15c   :  { %1534 = vmatmul.mubr.f32.gmra.mrb[4].mxu1 %v293_v19  ;;  %v295_v25 = vmax.f32 %v245_v20, 0.0 }
 0x15d   :  { %v294_v23 = vmax.f32 %v240_v22, 0.0  ;;  %v1485_v24 = vpop.f32.mrb[8].mxu0 }
 0x15e   :  { %v255_v26 = vadd.f32 %v1485_v24, %v1243_v0  ;;  %v249_v27 = vpop.f32.mrb[9].mxu0 }
 0x15f   :  { %v250_v28 = vadd.f32 %v1243_v0, %v249_v27  ;;  %1536 = vmatprep.mubr.f32.mxu1 %v294_v23 }
 0x160   :  { %1537 = vmatmul.mubr.f32.gmra.mrb[6].mxu1 %v295_v25  ;;  %v297_v31 = vmax.f32 %v255_v26, 0.0 }
 0x161   :  { %v296_v29 = vmax.f32 %v250_v28, 0.0  ;;  %v1488_v30 = vpop.f32.mrb[10].mxu0 }
 0x162   :  { %v265_v32 = vadd.f32 %v1488_v30, %v1243_v0  ;;  %v259_v33 = vpop.f32.mrb[11].mxu0 }
 0x163   :  { %v260_v34 = vadd.f32 %v1243_v0, %v259_v33  ;;  %1539 = vmatprep.mubr.f32.mxu1 %v296_v29 }
 0x164   :  { %1540 = vmatmul.mubr.f32.gmra.mrb[8].mxu1 %v297_v31  ;;  %v299_v37 = vmax.f32 %v265_v32, 0.0 }
 0x165   :  { %v298_v35 = vmax.f32 %v260_v34, 0.0  ;;  %v1491_v36 = vpop.f32.mrb[12].mxu0 }
 0x166   :  { %v275_v38 = vadd.f32 %v1491_v36, %v1243_v0  ;;  %v269_v39 = vpop.f32.mrb[13].mxu0 }
 0x167   :  { %v270_v40 = vadd.f32 %v1243_v0, %v269_v39  ;;  %1542 = vmatprep.mubr.f32.mxu1 %v298_v35 }
 0x168   :  { %1543 = vmatmul.mubr.f32.gmra.mrb[10].mxu1 %v299_v37  ;;  %v301_v43 = vmax.f32 %v275_v38, 0.0 }
 0x169   :  { %v300_v41 = vmax.f32 %v270_v40, 0.0  ;;  %v1494_v42 = vpop.f32.mrb[14].mxu0 }
 0x16a   :  { %v285_v44 = vadd.f32 %v1494_v42, %v1243_v0  ;;  %v279_v45 = vpop.f32.mrb[15].mxu0 }
 0x16b   :  { %v280_v46 = vadd.f32 %v1243_v0, %v279_v45  ;;  %1545 = vmatprep.mubr.f32.mxu1 %v300_v41  ;;  %v2366_v45 = vld [vmem:[%s2687_s1 + $0x18] sm:$0xff] }
 0x16c   :  { %1546 = vmatmul.mubr.f32.gmra.mrb[12].mxu1 %v301_v43  ;;  %v303_v48 = vmax.f32 %v285_v44, 0.0  ;;  %v2354_v43 = vld [vmem:[%s2687_s1 + $0x8] sm:$0xff]  ;;  %v2359_v44 = vld [vmem:[%s2687_s1 + $0x10] sm:$0xff] }
 0x16d   :  { %v302_v47 = vmax.f32 %v280_v46, 0.0  ;;  %v2371_v46 = vld [vmem:[%s2687_s1 + $0x20] sm:$0xff] }
 0x16f   :  { %1548 = vmatprep.mubr.f32.mxu1 %v302_v47  ;;  %v2378_v47 = vld [vmem:[%s2687_s1 + $0x28] sm:$0xff] }
 0x170   :  { %1549 = vmatmul.mubr.f32.gmra.mrb[14].mxu1 %v303_v48  ;;  %v2383_v48 = vld [vmem:[%s2687_s1 + $0x30] sm:$0xff] }
 0x171   :  { %1639 = vmatprep.mubr.f32.mxu1 %v2246_v49 }
 0x227   :  { %v1529_v51 = vpop.f32.mrb[0].mxu1 }
 0x228   :  { %v2256_v52 = vadd.f32 %v1529_v51, %v2253_v50  ;;  %v393_v53 = vpop.f32.mrb[1].mxu1  ;;  %v2395_v51 = vld [vmem:[%s2687_s1 + $0x40] sm:$0xff] }
 0x229   :  { %v2259_v54 = vadd.f32 %v2253_v50, %v393_v53  ;;  %v2402_v53 = vld [vmem:[%s2687_s1 + $0x48] sm:$0xff] }
 0x22a   :  { %v473_v55 = vmax.f32 %v2256_v52, 0.0 }
 0x22b   :  { %v472_v56 = vmax.f32 %v2259_v54, 0.0  ;;  %v1532_v57 = vpop.f32.mrb[2].mxu1 }
 0x22c   :  { %v2264_v58 = vadd.f32 %v1532_v57, %v2253_v50  ;;  %v403_v59 = vpop.f32.mrb[3].mxu1  ;;  %v2407_v57 = vld [vmem:[%s2687_s1 + $0x50] sm:$0xff] }
 0x22d   :  { %v1839_v60 = vpack.c.bf16 %v473_v55, %v472_v56  ;;  %v2271_v61 = vadd.f32 %v2253_v50, %v403_v59  ;;  %v2414_v59 = vld [vmem:[%s2687_s1 + $0x58] sm:$0xff] }
 0x22e   :  { %v475_v62 = vmax.f32 %v2264_v58, 0.0 }
 0x22f   :  { %v474_v63 = vmax.f32 %v2271_v61, 0.0  ;;  %v1535_v0 = vpop.f32.mrb[4].mxu1  ;;  %1840 = vmatprep.subr.bf16.mxu0 %v1839_v60 }
 0x230   :  { %v2276_v1 = vadd.f32 %v1535_v0, %v2253_v50  ;;  %v413_v2 = vpop.f32.mrb[5].mxu1  ;;  %1842 = vmatpush3.bf16.msra.mxu0 %v1839_v60  ;;  %v2419_v60 = vld [vmem:[%s2687_s1 + $0x60] sm:$0xff]  ;;  %v2426_v0 = vld [vmem:[%s2687_s1 + $0x68] sm:$0xff] }
 0x231   :  { %v1843_v3 = vpack.c.bf16 %v475_v62, %v474_v63  ;;  %v2283_v4 = vadd.f32 %v2253_v50, %v413_v2  ;;  %v2431_v2 = vld [vmem:[%s2687_s1 + $0x70] sm:$0xff] }
 0x232   :  { %v477_v5 = vmax.f32 %v2276_v1, 0.0 }
 0x233   :  { %v476_v6 = vmax.f32 %v2283_v4, 0.0  ;;  %v1538_v7 = vpop.f32.mrb[6].mxu1  ;;  %1844 = vmatprep.subr.bf16.mxu0 %v1843_v3 }
 0x234   :  { %v2288_v8 = vadd.f32 %v1538_v7, %v2253_v50  ;;  %v423_v9 = vpop.f32.mrb[7].mxu1  ;;  %1846 = vmatpush3.bf16.msra.mxu0 %v1843_v3  ;;  %v2438_v3 = vld [vmem:[%s2687_s1 + $0x78] sm:$0xff] }
 0x235   :  { %v1847_v10 = vpack.c.bf16 %v477_v5, %v476_v6  ;;  %v2295_v11 = vadd.f32 %v2253_v50, %v423_v9 }
 0x236   :  { %v479_v12 = vmax.f32 %v2288_v8, 0.0 }
 0x237   :  { %v478_v13 = vmax.f32 %v2295_v11, 0.0  ;;  %v1541_v14 = vpop.f32.mrb[8].mxu1  ;;  %1848 = vmatprep.subr.bf16.mxu0 %v1847_v10 }
 0x238   :  { %v2300_v15 = vadd.f32 %v1541_v14, %v2253_v50  ;;  %v433_v16 = vpop.f32.mrb[9].mxu1  ;;  %1850 = vmatpush3.bf16.msra.mxu0 %v1847_v10 }
 0x239   :  { %v1851_v17 = vpack.c.bf16 %v479_v12, %v478_v13  ;;  %v2307_v18 = vadd.f32 %v2253_v50, %v433_v16 }
 0x23a   :  { %v481_v19 = vmax.f32 %v2300_v15, 0.0 }
 0x23b   :  { %v480_v20 = vmax.f32 %v2307_v18, 0.0  ;;  %v1544_v21 = vpop.f32.mrb[10].mxu1  ;;  %1852 = vmatprep.subr.bf16.mxu0 %v1851_v17 }
 0x23c   :  { %v2312_v22 = vadd.f32 %v1544_v21, %v2253_v50  ;;  %v443_v23 = vpop.f32.mrb[11].mxu1  ;;  %1854 = vmatpush3.bf16.msra.mxu0 %v1851_v17 }
 0x23d   :  { %v1855_v24 = vpack.c.bf16 %v481_v19, %v480_v20  ;;  %v2319_v25 = vadd.f32 %v2253_v50, %v443_v23 }
 0x23e   :  { %v483_v26 = vmax.f32 %v2312_v22, 0.0 }
 0x23f   :  { %v482_v27 = vmax.f32 %v2319_v25, 0.0  ;;  %v1547_v28 = vpop.f32.mrb[12].mxu1  ;;  %1856 = vmatprep.subr.bf16.mxu0 %v1855_v24 }
 0x240   :  { %v2324_v29 = vadd.f32 %v1547_v28, %v2253_v50  ;;  %v453_v30 = vpop.f32.mrb[13].mxu1  ;;  %1858 = vmatpush3.bf16.msra.mxu0 %v1855_v24 }
 0x241   :  { %v1859_v31 = vpack.c.bf16 %v483_v26, %v482_v27  ;;  %v2331_v32 = vadd.f32 %v2253_v50, %v453_v30 }
 0x242   :  { %v485_v33 = vmax.f32 %v2324_v29, 0.0 }
 0x243   :  { %v484_v34 = vmax.f32 %v2331_v32, 0.0  ;;  %v1550_v35 = vpop.f32.mrb[14].mxu1  ;;  %1860 = vmatprep.subr.bf16.mxu0 %v1859_v31 }
 0x244   :  { %v2336_v36 = vadd.f32 %v1550_v35, %v2253_v50  ;;  %v463_v37 = vpop.f32.mrb[15].mxu1  ;;  %1862 = vmatpush3.bf16.msra.mxu0 %v1859_v31 }
 0x245   :  { %v1863_v38 = vpack.c.bf16 %v485_v33, %v484_v34  ;;  %v2343_v39 = vadd.f32 %v2253_v50, %v463_v37  ;;  %v2390_v50 = vld [vmem:[%s2687_s1 + $0x38] sm:$0xff]  ;;  %s826_s1 = sld [smem:[#allocation2]] }
 0x246   :  { %v487_v40 = vmax.f32 %v2336_v36, 0.0  ;;  %v1041_v36 = vld [vmem:[#allocation10 + $0x10] sm:$0xff] }
 0x247   :  { %v486_v41 = vmax.f32 %v2343_v39, 0.0  ;;  %1864 = vmatprep.subr.bf16.mxu0 %v1863_v38 }
 0x248   :  { %1866 = vmatpush3.bf16.msra.mxu0 %v1863_v38  ;;  %v1042_v38 = vld [vmem:[#allocation10 + $0x18] sm:$0xff] }
 0x249   :  { %v1867_v42 = vpack.c.bf16 %v487_v40, %v486_v41  ;;  %v1939_v39 = vpack.c.bf16 %v1042_v38, %v1041_v36 }
 0x24b   :  { %1868 = vmatprep.subr.bf16.mxu0 %v1867_v42 }
 0x24c   :  { %1870 = vmatpush3.bf16.msra.mxu0 %v1867_v42 }
 0x24f   :  { %1584 = vmatmul.mubr.f32.vlgmr.msra.gmra.mrb[16].mxu0 %v2354_v43 }
 0x250   :  { %1586 = vmatprep.mubr.f32.mxu0 %v2359_v44 }
 0x253   :  { %1587 = vmatmul.mubr.f32.gmra.mrb[18].mxu0 %v2366_v45 }
 0x254   :  { %1589 = vmatprep.mubr.f32.mxu0 %v2371_v46 }
 0x257   :  { %1590 = vmatmul.mubr.f32.gmra.mrb[20].mxu0 %v2378_v47 }
 0x258   :  { %1592 = vmatprep.mubr.f32.mxu0 %v2383_v48 }
 0x25b   :  { %1593 = vmatmul.mubr.f32.gmra.mrb[22].mxu0 %v2390_v50 }
 0x25c   :  { %1595 = vmatprep.mubr.f32.mxu0 %v2395_v51 }
 0x25f   :  { %1596 = vmatmul.mubr.f32.gmra.mrb[24].mxu0 %v2402_v53 }
 0x260   :  { %1598 = vmatprep.mubr.f32.mxu0 %v2407_v57 }
 0x263   :  { %1599 = vmatmul.mubr.f32.gmra.mrb[26].mxu0 %v2414_v59 }
 0x264   :  { %1601 = vmatprep.mubr.f32.mxu0 %v2419_v60 }
 0x267   :  { %1602 = vmatmul.mubr.f32.gmra.mrb[28].mxu0 %v2426_v0 }
 0x268   :  { %1604 = vmatprep.mubr.f32.mxu0 %v2431_v2 }
 0x26b   :  { %1605 = vmatmul.mubr.f32.gmra.mrb[30].mxu0 %v2438_v3 }
 0x26c   :  { %1695 = vmatprep.mubr.f32.mxu0 %v2246_v49 }
 0x322   :  { %v1585_v7 = vpop.f32.mrb[16].mxu0 }
 0x323   :  { %v2444_v9 = vadd.f32 %v1585_v7, %v473_v55  ;;  %v570_v10 = vpop.f32.mrb[17].mxu0  ;;  %v1045_v7 = vld [vmem:[#allocation10 + $0x30] sm:$0xff] }
 0x324   :  { %v2448_v14 = vadd.f32 %v570_v10, %v472_v56  ;;  %v1046_v10 = vld [vmem:[#allocation10 + $0x38] sm:$0xff] }
 0x326   :  { %v1871_v16 = vpack.c.bf16 %v2444_v9, %v2448_v14  ;;  %v1588_v17 = vpop.f32.mrb[18].mxu0 }
 0x327   :  { %v2454_v21 = vadd.f32 %v1588_v17, %v475_v62  ;;  %v580_v23 = vpop.f32.mrb[19].mxu0  ;;  %v1047_v17 = vld [vmem:[#allocation10 + $0x40] sm:$0xff] }
 0x328   :  { %v2458_v49 = vadd.f32 %v580_v23, %v474_v63  ;;  %1872 = vmatprep.subr.bf16.mxu1 %v1871_v16  ;;  %v1048_v23 = vld [vmem:[#allocation10 + $0x48] sm:$0xff] }
 0x329   :  { %1874 = vmatpush3.bf16.msra.mxu1 %v1871_v16  ;;  %v1947_v16 = vpack.c.bf16 %v1046_v10, %v1045_v7 }
 0x32a   :  { %v1875_v52 = vpack.c.bf16 %v2454_v21, %v2458_v49  ;;  %v1591_v54 = vpop.f32.mrb[20].mxu0 }
 0x32b   :  { %v2464_v55 = vadd.f32 %v1591_v54, %v477_v5  ;;  %v590_v56 = vpop.f32.mrb[21].mxu0  ;;  %v1049_v54 = vld [vmem:[#allocation10 + $0x50] sm:$0xff] }
 0x32c   :  { %v2468_v58 = vadd.f32 %v590_v56, %v476_v6  ;;  %1876 = vmatprep.subr.bf16.mxu1 %v1875_v52  ;;  %v1050_v56 = vld [vmem:[#allocation10 + $0x58] sm:$0xff] }
 0x32d   :  { %1878 = vmatpush3.bf16.msra.mxu1 %v1875_v52  ;;  %v1951_v52 = vpack.c.bf16 %v1048_v23, %v1047_v17 }
 0x32e   :  { %v1879_v61 = vpack.c.bf16 %v2464_v55, %v2468_v58  ;;  %v1594_v62 = vpop.f32.mrb[22].mxu0 }
 0x32f   :  { %v2474_v63 = vadd.f32 %v1594_v62, %v479_v12  ;;  %v600_v24 = vpop.f32.mrb[23].mxu0 }
 0x330   :  { %v2478_v1 = vadd.f32 %v600_v24, %v478_v13  ;;  %1880 = vmatprep.subr.bf16.mxu1 %v1879_v61 }
 0x331   :  { %1882 = vmatpush3.bf16.msra.mxu1 %v1879_v61  ;;  %v1955_v61 = vpack.c.bf16 %v1050_v56, %v1049_v54 }
 0x332   :  { %v1883_v4 = vpack.c.bf16 %v2474_v63, %v2478_v1  ;;  %v1597_v5 = vpop.f32.mrb[24].mxu0 }
 0x333   :  { %v2484_v6 = vadd.f32 %v1597_v5, %v481_v19  ;;  %v610_v28 = vpop.f32.mrb[25].mxu0 }
 0x334   :  { %v2488_v8 = vadd.f32 %v610_v28, %v480_v20  ;;  %1884 = vmatprep.subr.bf16.mxu1 %v1883_v4 }
 0x335   :  { %1886 = vmatpush3.bf16.msra.mxu1 %v1883_v4 }
 0x336   :  { %v1887_v11 = vpack.c.bf16 %v2484_v6, %v2488_v8  ;;  %v1600_v12 = vpop.f32.mrb[26].mxu0 }
 0x337   :  { %v2494_v13 = vadd.f32 %v1600_v12, %v483_v26  ;;  %v620_v30 = vpop.f32.mrb[27].mxu0 }
 0x338   :  { %v2498_v15 = vadd.f32 %v620_v30, %v482_v27  ;;  %1888 = vmatprep.subr.bf16.mxu1 %v1887_v11 }
 0x339   :  { %1890 = vmatpush3.bf16.msra.mxu1 %v1887_v11 }
 0x33a   :  { %v1891_v18 = vpack.c.bf16 %v2494_v13, %v2498_v15  ;;  %v1603_v19 = vpop.f32.mrb[28].mxu0 }
 0x33b   :  { %v2504_v20 = vadd.f32 %v1603_v19, %v485_v33  ;;  %v630_v31 = vpop.f32.mrb[29].mxu0  ;;  %v1039_v33 = vld [vmem:[#allocation10] sm:$0xff] }
 0x33c   :  { %v2508_v22 = vadd.f32 %v630_v31, %v484_v34  ;;  %1892 = vmatprep.subr.bf16.mxu1 %v1891_v18  ;;  %v1040_v34 = vld [vmem:[#allocation10 + $0x8] sm:$0xff] }
 0x33d   :  { %1894 = vmatpush3.bf16.msra.mxu1 %v1891_v18  ;;  %v1935_v37 = vpack.c.bf16 %v1040_v34, %v1039_v33 }
 0x33e   :  { %v1895_v25 = vpack.c.bf16 %v2504_v20, %v2508_v22  ;;  %v1606_v26 = vpop.f32.mrb[30].mxu0 }
 0x33f   :  { %v2514_v27 = vadd.f32 %v1606_v26, %v487_v40  ;;  %v640_v35 = vpop.f32.mrb[31].mxu0  ;;  %v1043_v40 = vld [vmem:[#allocation10 + $0x20] sm:$0xff] }
 0x340   :  { %v2518_v29 = vadd.f32 %v640_v35, %v486_v41  ;;  %1896 = vmatprep.subr.bf16.mxu1 %v1895_v25  ;;  %v1044_v41 = vld [vmem:[#allocation10 + $0x28] sm:$0xff] }
 0x341   :  { %1898 = vmatpush3.bf16.msra.mxu1 %v1895_v25  ;;  %v1943_v42 = vpack.c.bf16 %v1044_v41, %v1043_v40 }
 0x342   :  { %v1899_v32 = vpack.c.bf16 %v2514_v27, %v2518_v29 }
 0x344   :  { %1900 = vmatprep.subr.bf16.mxu1 %v1899_v32 }
 0x345   :  { %1902 = vmatpush3.bf16.msra.mxu1 %v1899_v32 }
 0x346   :  { %1936 = vmatprep.subr.bf16.mxu1 %v1935_v37 }
 0x348   :  { %1640 = vmatmul.mubr.f32.vlgmr.msra.gmra.mrb[16].mxu1 %v2354_v43 }
 0x349   :  { %1642 = vmatprep.mubr.f32.mxu1 %v2359_v44  ;;  %1938 = vmatpush3.bf16.msra.mxu1 %v1935_v37 }
 0x34a   :  { %1940 = vmatprep.subr.bf16.mxu1 %v1939_v39 }
 0x34c   :  { %1643 = vmatmul.mubr.f32.gmra.mrb[18].mxu1 %v2366_v45 }
 0x34d   :  { %1645 = vmatprep.mubr.f32.mxu1 %v2371_v46  ;;  %1942 = vmatpush3.bf16.msra.mxu1 %v1939_v39 }
 0x34e   :  { %1944 = vmatprep.subr.bf16.mxu1 %v1943_v42 }
 0x350   :  { %1646 = vmatmul.mubr.f32.gmra.mrb[20].mxu1 %v2378_v47 }
 0x351   :  { %1648 = vmatprep.mubr.f32.mxu1 %v2383_v48  ;;  %1946 = vmatpush3.bf16.msra.mxu1 %v1943_v42 }
 0x352   :  { %1948 = vmatprep.subr.bf16.mxu1 %v1947_v16 }
 0x354   :  { %1649 = vmatmul.mubr.f32.gmra.mrb[22].mxu1 %v2390_v50 }
 0x355   :  { %1651 = vmatprep.mubr.f32.mxu1 %v2395_v51  ;;  %1950 = vmatpush3.bf16.msra.mxu1 %v1947_v16 }
 0x356   :  { %1952 = vmatprep.subr.bf16.mxu1 %v1951_v52 }
 0x358   :  { %1652 = vmatmul.mubr.f32.gmra.mrb[24].mxu1 %v2402_v53 }
 0x359   :  { %1654 = vmatprep.mubr.f32.mxu1 %v2407_v57  ;;  %1954 = vmatpush3.bf16.msra.mxu1 %v1951_v52 }
 0x35a   :  { %1956 = vmatprep.subr.bf16.mxu1 %v1955_v61 }
 0x35c   :  { %1655 = vmatmul.mubr.f32.gmra.mrb[26].mxu1 %v2414_v59 }
 0x35d   :  { %1657 = vmatprep.mubr.f32.mxu1 %v2419_v60  ;;  %1958 = vmatpush3.bf16.msra.mxu1 %v1955_v61 }
 0x360   :  { %1658 = vmatmul.mubr.f32.gmra.mrb[28].mxu1 %v2426_v0 }
 0x361   :  { %1660 = vmatprep.mubr.f32.mxu1 %v2431_v2 }
 0x364   :  { %1661 = vmatmul.mubr.f32.gmra.mrb[30].mxu1 %v2438_v3 }
 0x41b   :  { %v1641_v62 = vpop.f32.mrb[16].mxu1 }
 0x41c   :  { %v2538_v24 = vadd.f32 %v1641_v62, %v2444_v9  ;;  %v731_v4 = vpop.f32.mrb[17].mxu1 }
 0x41d   :  { %v2541_v5 = vadd.f32 %v731_v4, %v2448_v14 }
 0x41f   :  { %v1903_v28 = vpack.c.bf16 %v2538_v24, %v2541_v5  ;;  %v1644_v11 = vpop.f32.mrb[18].mxu1 }
 0x420   :  { %v2546_v12 = vadd.f32 %v1644_v11, %v2454_v21  ;;  %v741_v30 = vpop.f32.mrb[19].mxu1 }
 0x421   :  { %v2549_v18 = vadd.f32 %v741_v30, %v2458_v49  ;;  %1904 = vmatprep.subr.bf16.mxu0 %v1903_v28 }
 0x422   :  { %1906 = vmatpush3.bf16.msra.mxu0 %v1903_v28 }
 0x423   :  { %v1907_v9 = vpack.c.bf16 %v2546_v12, %v2549_v18  ;;  %v1647_v19 = vpop.f32.mrb[20].mxu1 }
 0x424   :  { %v2554_v14 = vadd.f32 %v1647_v19, %v2464_v55  ;;  %v751_v31 = vpop.f32.mrb[21].mxu1 }
 0x425   :  { %v2557_v25 = vadd.f32 %v751_v31, %v2468_v58  ;;  %1908 = vmatprep.subr.bf16.mxu0 %v1907_v9 }
 0x426   :  { %1910 = vmatpush3.bf16.msra.mxu0 %v1907_v9 }
 0x427   :  { %v1911_v21 = vpack.c.bf16 %v2554_v14, %v2557_v25  ;;  %v1650_v49 = vpop.f32.mrb[22].mxu1 }
 0x428   :  { %v2562_v26 = vadd.f32 %v1650_v49, %v2474_v63  ;;  %v761_v35 = vpop.f32.mrb[23].mxu1 }
 0x429   :  { %v2565_v32 = vadd.f32 %v761_v35, %v2478_v1  ;;  %1912 = vmatprep.subr.bf16.mxu0 %v1911_v21 }
 0x42a   :  { %1914 = vmatpush3.bf16.msra.mxu0 %v1911_v21 }
 0x42b   :  { %v1915_v55 = vpack.c.bf16 %v2562_v26, %v2565_v32  ;;  %v1653_v58 = vpop.f32.mrb[24].mxu1 }
 0x42c   :  { %v2570_v33 = vadd.f32 %v1653_v58, %v2484_v6  ;;  %v771_v34 = vpop.f32.mrb[25].mxu1 }
 0x42d   :  { %v2573_v36 = vadd.f32 %v771_v34, %v2488_v8  ;;  %1916 = vmatprep.subr.bf16.mxu0 %v1915_v55 }
 0x42e   :  { %1918 = vmatpush3.bf16.msra.mxu0 %v1915_v55 }
 0x42f   :  { %v1919_v63 = vpack.c.bf16 %v2570_v33, %v2573_v36  ;;  %v1656_v1 = vpop.f32.mrb[26].mxu1 }
 0x430   :  { %v2578_v37 = vadd.f32 %v1656_v1, %v2494_v13  ;;  %v781_v38 = vpop.f32.mrb[27].mxu1 }
 0x431   :  { %v2581_v39 = vadd.f32 %v781_v38, %v2498_v15  ;;  %1920 = vmatprep.subr.bf16.mxu0 %v1919_v63 }
 0x432   :  { %1922 = vmatpush3.bf16.msra.mxu0 %v1919_v63 }
 0x433   :  { %v1923_v6 = vpack.c.bf16 %v2578_v37, %v2581_v39  ;;  %v1659_v8 = vpop.f32.mrb[28].mxu1 }
 0x434   :  { %v2586_v40 = vadd.f32 %v1659_v8, %v2504_v20  ;;  %v791_v41 = vpop.f32.mrb[29].mxu1 }
 0x435   :  { %v2589_v42 = vadd.f32 %v791_v41, %v2508_v22  ;;  %1924 = vmatprep.subr.bf16.mxu0 %v1923_v6 }
 0x436   :  { %1926 = vmatpush3.bf16.msra.mxu0 %v1923_v6 }
 0x437   :  { %v1927_v13 = vpack.c.bf16 %v2586_v40, %v2589_v42  ;;  %v1662_v15 = vpop.f32.mrb[30].mxu1 }
 0x438   :  { %v2594_v7 = vadd.f32 %v1662_v15, %v2514_v27  ;;  %v801_v10 = vpop.f32.mrb[31].mxu1 }
 0x439   :  { %v2597_v16 = vadd.f32 %v801_v10, %v2518_v29  ;;  %1928 = vmatprep.subr.bf16.mxu0 %v1927_v13 }
 0x43a   :  { %1930 = vmatpush3.bf16.msra.mxu0 %v1927_v13 }
 0x43b   :  { %v1931_v20 = vpack.c.bf16 %v2594_v7, %v2597_v16 }
 0x43d   :  { %1932 = vmatprep.subr.bf16.mxu0 %v1931_v20 }
 0x43e   :  { %1934 = vmatpush3.bf16.msra.mxu0 %v1931_v20 }
 0x441   :  { %1696 = vmatmul.mubr.f32.vlgmr.msra.gmra.mrb[32].mxu0 %v2354_v43  ;;  %v1051_v43 = vld [vmem:[#allocation10 + $0x60] sm:$0xff] }
 0x442   :  { %1698 = vmatprep.mubr.f32.mxu0 %v2359_v44  ;;  %v1052_v44 = vld [vmem:[#allocation10 + $0x68] sm:$0xff] }
 0x445   :  { %1699 = vmatmul.mubr.f32.gmra.mrb[34].mxu0 %v2366_v45  ;;  %v1959_v45 = vpack.c.bf16 %v1052_v44, %v1051_v43 }
 0x446   :  { %1701 = vmatprep.mubr.f32.mxu0 %v2371_v46  ;;  %v1053_v46 = vld [vmem:[#allocation10 + $0x70] sm:$0xff] }
 0x447   :  { %1960 = vmatprep.subr.bf16.mxu1 %v1959_v45 }
 0x448   :  { %1962 = vmatpush3.bf16.msra.mxu1 %v1959_v45 }
 0x449   :  { %1702 = vmatmul.mubr.f32.gmra.mrb[36].mxu0 %v2378_v47  ;;  %v1054_v47 = vld [vmem:[#allocation10 + $0x78] sm:$0xff] }
 0x44a   :  { %1704 = vmatprep.mubr.f32.mxu0 %v2383_v48  ;;  %v1963_v48 = vpack.c.bf16 %v1054_v47, %v1053_v46 }
 0x44c   :  { %1964 = vmatprep.subr.bf16.mxu1 %v1963_v48 }
 0x44d   :  { %1705 = vmatmul.mubr.f32.gmra.mrb[38].mxu0 %v2390_v50  ;;  %1966 = vmatpush3.bf16.msra.mxu1 %v1963_v48  ;;  %v2616_v50 = vstv %s826_s1 }
 0x44e   :  { %1707 = vmatprep.mubr.f32.mxu0 %v2395_v51  ;;  %v2618_v51 = vstv %s1245_s29  ;;  %v831_v29 = vmul.f32 %v2616_v50, %v2546_v12  ;;  %v830_v52 = vmul.f32 %v2616_v50, %v2549_v18  ;;  %v832_v12 = vmul.f32 %v2616_v50, %v2557_v25 }
 0x44f   :  { %v835_v49 = vmul.f32 %v2616_v50, %v2562_v26  ;;  %v834_v55 = vmul.f32 %v2616_v50, %v2565_v32  ;;  %v837_v6 = vmul.f32 %v2616_v50, %v2570_v33  ;;  %v836_v41 = vmul.f32 %v2616_v50, %v2573_v36 }
 0x450   :  { %v839_v44 = vmul.f32 %v2616_v50, %v2578_v37  ;;  %v838_v46 = vmul.f32 %v2616_v50, %v2581_v39 }
 0x451   :  { %1708 = vmatmul.mubr.f32.gmra.mrb[40].mxu0 %v2402_v53 }
 0x452   :  { %1710 = vmatprep.mubr.f32.mxu0 %v2407_v57  ;;  %v829_v57 = vmul.f32 %v2616_v50, %v2538_v24 }
 0x455   :  { %1711 = vmatmul.mubr.f32.gmra.mrb[42].mxu0 %v2414_v59 }
 0x456   :  { %1713 = vmatprep.mubr.f32.mxu0 %v2419_v60 }
 0x459   :  { %1714 = vmatmul.mubr.f32.gmra.mrb[44].mxu0 %v2426_v0  ;;  %v828_v0 = vmul.f32 %v2616_v50, %v2541_v5  ;;  %v833_v5 = vmul.f32 %v2616_v50, %v2554_v14 }
 0x45a   :  { %1716 = vmatprep.mubr.f32.mxu0 %v2431_v2 }
 0x45d   :  { %1717 = vmatmul.mubr.f32.gmra.mrb[46].mxu0 %v2438_v3 }
 0x514   :  { %v1697_v53 = vpop.f32.mrb[32].mxu0 }
 0x515   :  { %v992_v59 = vmul.f32 %v1697_v53, %v2618_v51  ;;  %v911_v60 = vpop.f32.mrb[33].mxu0 }
 0x516   :  { %v991_v2 = vmul.f32 %v2618_v51, %v911_v60  ;;  %v841_v60 = vmul.f32 %v2616_v50, %v2586_v40 }
 0x517   :  { %v1008_v3 = vsub.f32 %v829_v57, %v992_v59 }
 0x518   :  { %v1007_v22 = vsub.f32 %v828_v0, %v991_v2  ;;  %v1700_v27 = vpop.f32.mrb[34].mxu0  ;;  %v840_v2 = vmul.f32 %v2616_v50, %v2589_v42 }
 0x519   :  { %v994_v17 = vmul.f32 %v1700_v27, %v2618_v51  ;;  %v921_v23 = vpop.f32.mrb[35].mxu0  ;;  %v1024_v61 = vmax.f32 %v1008_v3, 0.0 }
 0x51a   :  { %v1023_v54 = vmax.f32 %v1007_v22, 0.0  ;;  %v993_v56 = vmul.f32 %v2618_v51, %v921_v23  ;;  %v843_v23 = vmul.f32 %v2616_v50, %v2594_v7  ;;  %v1246_v7 = vld [vmem:[%s2695_s9] ss:$0 sm:$0xff]  ;;  %s2114_s9 = smov [#allocation12]  }
 0x51b   :  { %v1010_v62 = vsub.f32 %v831_v29, %v994_v17  ;;  %s1228_s30 = sshll.u32 %s2114_s9, 4  ;;  %s1229_s30 = int_to_ptr.vmem [resolvable:$true] %s1228_s30 }
 0x51c   :  { %v1009_v24 = vsub.f32 %v830_v52, %v993_v56  ;;  %v1703_v4 = vpop.f32.mrb[36].mxu0  ;;  %1751 = vmatprep.mubr.f32.mxu1 %v1023_v54  ;;  %v842_v54 = vmul.f32 %v2616_v50, %v2597_v16  ;;  %s2075_s11 = scalar_lea.vmem %s1229_s30, 2048  ;;  %p2080_p10 = scmp.lt.s32.totalorder %s1229_s30, %s1229_s30 }
 0x51d   :  { %v996_v28 = vmul.f32 %v1703_v4, %v2618_v51  ;;  %v931_v11 = vpop.f32.mrb[37].mxu0  ;;  %1752 = vmatmul.mubr.f32.vlgmr.msra.gmra.mrb[32].mxu1 %v1024_v61  ;;  %v1026_v9 = vmax.f32 %v1010_v62, 0.0  ;;  %p2076_p9 = scmp.ne.s32.totalorder %s1229_s30, %s2075_s11  ;;  %p2081_p11 = scmp.lt.s32.totalorder %s2075_s11, %s2075_s11 }
 0x51e   :  { %v1025_v30 = vmax.f32 %v1009_v24, 0.0  ;;  %v995_v18 = vmul.f32 %v2618_v51, %v931_v11 }
 0x51f   :  { %v1012_v19 = vsub.f32 %v833_v5, %v996_v28  ;;  %p2082_p12 = por %p2081_p11, %p2080_p10 }
 0x520   :  { %v1011_v31 = vsub.f32 %v832_v12, %v995_v18  ;;  %v1706_v21 = vpop.f32.mrb[38].mxu0  ;;  %1754 = vmatprep.mubr.f32.mxu1 %v1025_v30 }
 0x521   :  { %v998_v14 = vmul.f32 %v1706_v21, %v2618_v51  ;;  %v941_v35 = vpop.f32.mrb[39].mxu0  ;;  %1755 = vmatmul.mubr.f32.gmra.mrb[34].mxu1 %v1026_v9  ;;  %v1028_v34 = vmax.f32 %v1012_v19, 0.0  ;;  %p2083_p13 = pnand %p2082_p12, %p2076_p9 }
 0x522   :  { %v1027_v58 = vmax.f32 %v1011_v31, 0.0  ;;  %v997_v25 = vmul.f32 %v2618_v51, %v941_v35 }
 0x523   :  { %v1014_v63 = vsub.f32 %v835_v49, %v998_v14 }
 0x524   :  { %v1013_v1 = vsub.f32 %v834_v55, %v997_v25  ;;  %v1709_v38 = vpop.f32.mrb[40].mxu0  ;;  %1757 = vmatprep.mubr.f32.mxu1 %v1027_v58 }
 0x525   :  { %v1000_v26 = vmul.f32 %v1709_v38, %v2618_v51  ;;  %v951_v8 = vpop.f32.mrb[41].mxu0  ;;  %1758 = vmatmul.mubr.f32.gmra.mrb[36].mxu1 %v1028_v34  ;;  %v1030_v15 = vmax.f32 %v1014_v63, 0.0 }
 0x526   :  { %v1029_v13 = vmax.f32 %v1013_v1, 0.0  ;;  %v999_v32 = vmul.f32 %v2618_v51, %v951_v8 }
 0x527   :  { %v1016_v10 = vsub.f32 %v837_v6, %v1000_v26 }
 0x528   :  { %v1015_v20 = vsub.f32 %v836_v41, %v999_v32  ;;  %v1712_v43 = vpop.f32.mrb[42].mxu0  ;;  %1760 = vmatprep.mubr.f32.mxu1 %v1029_v13 }
 0x529   :  { %v1002_v33 = vmul.f32 %v1712_v43, %v2618_v51  ;;  %v961_v45 = vpop.f32.mrb[43].mxu0  ;;  %1761 = vmatmul.mubr.f32.gmra.mrb[38].mxu1 %v1030_v15  ;;  %v1032_v48 = vmax.f32 %v1016_v10, 0.0 }
 0x52a   :  { %v1031_v47 = vmax.f32 %v1015_v20, 0.0  ;;  %v1001_v36 = vmul.f32 %v2618_v51, %v961_v45 }
 0x52b   :  { %v1018_v53 = vsub.f32 %v839_v44, %v1002_v33 }
 0x52c   :  { %v1017_v57 = vsub.f32 %v838_v46, %v1001_v36  ;;  %v1715_v59 = vpop.f32.mrb[44].mxu0  ;;  %1763 = vmatprep.mubr.f32.mxu1 %v1031_v47 }
 0x52d   :  { %v1004_v37 = vmul.f32 %v1715_v59, %v2618_v51  ;;  %v971_v0 = vpop.f32.mrb[45].mxu0  ;;  %1764 = vmatmul.mubr.f32.gmra.mrb[40].mxu1 %v1032_v48  ;;  %v1034_v22 = vmax.f32 %v1018_v53, 0.0 }
 0x52e   :  { %v1033_v3 = vmax.f32 %v1017_v57, 0.0  ;;  %v1003_v39 = vmul.f32 %v2618_v51, %v971_v0 }
 0x52f   :  { %v1020_v27 = vsub.f32 %v841_v60, %v1004_v37 }
 0x530   :  { %v1019_v29 = vsub.f32 %v840_v2, %v1003_v39  ;;  %v1718_v17 = vpop.f32.mrb[46].mxu0  ;;  %1766 = vmatprep.mubr.f32.mxu1 %v1033_v3 }
 0x531   :  { %v1006_v40 = vmul.f32 %v1718_v17, %v2618_v51  ;;  %v981_v52 = vpop.f32.mrb[47].mxu0  ;;  %1767 = vmatmul.mubr.f32.gmra.mrb[42].mxu1 %v1034_v22  ;;  %v1036_v61 = vmax.f32 %v1020_v27, 0.0 }
 0x532   :  { %v1035_v56 = vmax.f32 %v1019_v29, 0.0  ;;  %v1005_v42 = vmul.f32 %v2618_v51, %v981_v52 }
 0x533   :  { %v1022_v62 = vsub.f32 %v843_v23, %v1006_v40 }
 0x534   :  { %v1021_v24 = vsub.f32 %v842_v54, %v1005_v42  ;;  %1769 = vmatprep.mubr.f32.mxu1 %v1035_v56 }
 0x535   :  { %1770 = vmatmul.mubr.f32.gmra.mrb[44].mxu1 %v1036_v61  ;;  %v1038_v5 = vmax.f32 %v1022_v62, 0.0 }
 0x536   :  { %v1037_v4 = vmax.f32 %v1021_v24, 0.0 }
 0x538   :  { %1772 = vmatprep.mubr.f32.mxu1 %v1037_v4 }
 0x539   :  { %1773 = vmatmul.mubr.f32.gmra.mrb[46].mxu1 %v1038_v5 }
 0x5f0   :  { %v1753_v28 = vpop.f32.mrb[32].mxu1 }
 0x5f1   :  { %v1134_v11 = vadd.f32 %v1753_v28, %v1246_v7  ;;  %v1128_v12 = vpop.f32.mrb[33].mxu1 }
 0x5f2   :  { %v1129_v16 = vadd.f32 %v1246_v7, %v1128_v12 }
 0x5f3   :  { %1208 = vst [vmem:[#allocation12 + $0x8] sm:$0xff] %v1134_v11 }
 0x5f4   :  { %1207 = vst [vmem:[#allocation12] sm:$0xff] %v1129_v16  ;;  %v1756_v50 = vpop.f32.mrb[34].mxu1 }
 0x5f5   :  { %v1144_v51 = vadd.f32 %v1756_v50, %v1246_v7  ;;  %v1138_v30 = vpop.f32.mrb[35].mxu1 }
 0x5f6   :  { %v1139_v18 = vadd.f32 %v1246_v7, %v1138_v30 }
 0x5f7   :  { %1210 = vst [vmem:[#allocation12 + $0x18] sm:$0xff] %v1144_v51 }
 0x5f8   :  { %1209 = vst [vmem:[#allocation12 + $0x10] sm:$0xff] %v1139_v18  ;;  %v1759_v9 = vpop.f32.mrb[36].mxu1 }
 0x5f9   :  { %v1154_v19 = vadd.f32 %v1759_v9, %v1246_v7  ;;  %v1148_v31 = vpop.f32.mrb[37].mxu1 }
 0x5fa   :  { %v1149_v21 = vadd.f32 %v1246_v7, %v1148_v31 }
 0x5fb   :  { %1212 = vst [vmem:[#allocation12 + $0x28] sm:$0xff] %v1154_v19 }
 0x5fc   :  { %1211 = vst [vmem:[#allocation12 + $0x20] sm:$0xff] %v1149_v21  ;;  %v1762_v49 = vpop.f32.mrb[38].mxu1 }
 0x5fd   :  { %v1164_v14 = vadd.f32 %v1762_v49, %v1246_v7  ;;  %v1158_v35 = vpop.f32.mrb[39].mxu1 }
 0x5fe   :  { %v1159_v55 = vadd.f32 %v1246_v7, %v1158_v35 }
 0x5ff   :  { %1214 = vst [vmem:[#allocation12 + $0x38] sm:$0xff] %v1164_v14 }
 0x600   :  { %1213 = vst [vmem:[#allocation12 + $0x30] sm:$0xff] %v1159_v55  ;;  %v1765_v58 = vpop.f32.mrb[40].mxu1 }
 0x601   :  { %v1174_v25 = vadd.f32 %v1765_v58, %v1246_v7  ;;  %v1168_v34 = vpop.f32.mrb[41].mxu1 }
 0x602   :  { %v1169_v63 = vadd.f32 %v1246_v7, %v1168_v34 }
 0x603   :  { %1216 = vst [vmem:[#allocation12 + $0x48] sm:$0xff] %v1174_v25 }
 0x604   :  { %1215 = vst [vmem:[#allocation12 + $0x40] sm:$0xff] %v1169_v63  ;;  %v1768_v1 = vpop.f32.mrb[42].mxu1 }
 0x605   :  { %v1184_v38 = vadd.f32 %v1768_v1, %v1246_v7  ;;  %v1178_v6 = vpop.f32.mrb[43].mxu1 }
 0x606   :  { %v1179_v26 = vadd.f32 %v1246_v7, %v1178_v6 }
 0x607   :  { %1218 = vst [vmem:[#allocation12 + $0x58] sm:$0xff] %v1184_v38 }
 0x608   :  { %1217 = vst [vmem:[#allocation12 + $0x50] sm:$0xff] %v1179_v26  ;;  %v1771_v8 = vpop.f32.mrb[44].mxu1 }
 0x609   :  { %v1194_v41 = vadd.f32 %v1771_v8, %v1246_v7  ;;  %v1188_v13 = vpop.f32.mrb[45].mxu1 }
 0x60a   :  { %v1189_v32 = vadd.f32 %v1246_v7, %v1188_v13 }
 0x60b   :  { %1220 = vst [vmem:[#allocation12 + $0x68] sm:$0xff] %v1194_v41 }
 0x60c   :  { %1219 = vst [vmem:[#allocation12 + $0x60] sm:$0xff] %v1189_v32  ;;  %v1774_v15 = vpop.f32.mrb[46].mxu1 }
 0x60d   :  { %v1204_v10 = vadd.f32 %v1774_v15, %v1246_v7  ;;  %v1198_v20 = vpop.f32.mrb[47].mxu1 }
 0x60e   :  { %v1199_v43 = vadd.f32 %v1246_v7, %v1198_v20 }
 0x60f   :  { %1222 = vst [vmem:[#allocation12 + $0x78] sm:$0xff] %v1204_v10 }
 0x610   :  { %1221 = vst [vmem:[#allocation12 + $0x70] sm:$0xff] %v1199_v43 }
 0x611   :  { %2086 = shalt.err (!%p2083_p13)
}
 0x612   :  { %s2087_s4 = scalar_lea.hbm %s2696_s10, 2048 }
 0x613   :  { %p2088_p0 = scmp.ne.s32.totalorder %s2696_s10, %s2087_s4  ;;  %p2091_p1 = scmp.lt.u32.totalorder %s2087_s4, %s2696_s10 }
 0x615   :  { %p2093_p2 = pnand %p2091_p1, %p2088_p0 }
 0x617   :  { %2096 = shalt.err (!%p2093_p2)
}
 0x618   :  { %1234 = dma.vmem_to_hbm [thread:$0]  %s1229_s30, 2048, %s2696_s10, [#allocation4], %s2108_s0, %s2108_s0, %s2109_s25  }
 0x619   :  { %2105 = dma.done.wait [#allocation4], 2048  }
 0x61a   :  { %2106 = vsyncadd [#allocation4], 4294965248 }
 0x61b   :  { %1238 = vsyncpa [#allocation3], 1 }
 0x61c   :  { %1239 = vsyncpa [#allocation8], 1 }
 0x61d   :  { %1240 = vsyncpa [#allocation11], 1 }
 0x61e   :  { %1241 = vsyncpa [#allocation4], 1 }
 0x61f   :  { %1242 = vsyncpa [#allocation5], 1 }

</bundles_post_ra>
